<compile_context>
chip_gen: v6e
topology: v6e:2x2x1
jax: 0.10.0
libtpu: 0.0.40
codegen_flags: <defaults>
</compile_context>

<pallas_src>
import jax
import jax.numpy as jnp
from jax.experimental import pallas as pl
from jax.experimental.pallas import tpu as pltpu


def _round_up(x, m):
    return ((x + m - 1) // m) * m


def _ffn_kernel(x_ref, w1_ref, b1_ref, w2_ref, b2_ref, o_ref, acc_ref):
    k = pl.program_id(1)

    @pl.when(k == 0)
    def _init():
        acc_ref[...] = jnp.zeros_like(acc_ref)

    # Scaling is pre-folded into W1/b1, so the MXU LHS is just x in bf16.
    x_lhs = x_ref[...].astype(w1_ref.dtype)                     # (tm, d_model) bf16

    # Linear 1 slice (bf16 MXU operands, f32 accumulation) + bias.
    h = jnp.dot(x_lhs, w1_ref[...], preferred_element_type=jnp.float32)
    h = h + b1_ref[...]
    # SiLU = h * sigmoid(h); exp + approx reciprocal both ride the EUP slot.
    h = h * pl.reciprocal(1.0 + jnp.exp(-h), approx=True)

    # Linear 2 partial product accumulated into the resident f32 scratch.
    acc_ref[...] += jnp.dot(h.astype(w2_ref.dtype), w2_ref[...],
                            preferred_element_type=jnp.float32)

    @pl.when(k == pl.num_programs(1) - 1)
    def _finalize():
        o_ref[...] = (x_ref[...] + acc_ref[...] + b2_ref[...]).astype(o_ref.dtype)


def ffn_module(x, x_mask, params, *, tm=512, max_inner_chunk=1024):
    """x: (B, T, d_model). x_mask is unused (matches the PyTorch forward)."""
    del x_mask
    B, T, d_model = x.shape
    d_inner = params["w1"].shape[1]
    M = B * T

    # ---- Row tiling: large tile, but >= 2 row steps when possible (v7x 2 TCs).
    tm_eff = min(tm, _round_up(M, 8))
    if M > 8 and pl.cdiv(M, tm_eff) < 2:
        tm_eff = max(8, _round_up(pl.cdiv(M, 2), 8))
    grid_rows = pl.cdiv(M, tm_eff)

    # ---- d_inner chunking as a grid reduction axis (streamed weight slices).
    # Chunks stay lane-dense (multiples of 128) or we keep the full d_inner.
    n_chunks = 1
    while ((d_inner // n_chunks) > max_inner_chunk
           and d_inner % (2 * n_chunks) == 0
           and (d_inner // (2 * n_chunks)) % 128 == 0):
        n_chunks *= 2
    chunk = d_inner // n_chunks

    # ---- Parameter prep: fold Scaling into Linear1 (f32), cast MXU operands.
    # (In production fold once outside the step fn; this is a tiny op here.)
    scale = params["scale"].reshape(d_model).astype(jnp.float32)
    shift = params["shift"].reshape(1, d_model).astype(jnp.float32)
    w1_f32 = params["w1"].astype(jnp.float32)          # (d_model, d_inner) == W1.T
    w1 = (scale[:, None] * w1_f32).astype(jnp.bfloat16)
    b1 = (jnp.dot(shift, w1_f32)
          + params["b1"].reshape(1, d_inner)).astype(jnp.float32)
    w2 = params["w2"].astype(jnp.bfloat16)             # (d_inner, d_model) == W2.T
    b2 = params["b2"].reshape(1, d_model).astype(jnp.float32)

    x2d = x.reshape(M, d_model)

    # ---- Generation-aware VMEM limit: actual need (+headroom), <=85% physical.
    w_bufs = 2 if n_chunks > 1 else 1                  # streamed vs resident
    vmem_need = (
        2 * tm_eff * d_model * 4                       # x tile (double-buffered)
        + 2 * tm_eff * d_model * 4                     # out tile (double-buffered)
        + tm_eff * d_model * 4                         # f32 accumulator scratch
        + w_bufs * d_model * chunk * 2                 # W1 slice(s), bf16
        + w_bufs * chunk * d_model * 2                 # W2 slice(s), bf16
        + w_bufs * chunk * 4 + d_model * 4             # biases
        + tm_eff * chunk * 4                           # live f32 `h` intermediate
        + (2 << 20)                                    # internal scratch headroom
    )
    try:
        vmem_cap = pltpu.get_tpu_info().vmem_capacity_bytes
    except Exception:  # conservative fallback (v7x has 64 MiB per TC)
        vmem_cap = 64 * 1024 * 1024
    vmem_limit = min(int(0.85 * vmem_cap), max(int(1.25 * vmem_need), 32 << 20))

    cost = pl.CostEstimate(
        flops=4 * M * d_model * d_inner,               # two matmuls
        transcendentals=M * d_inner,                   # exp in SiLU
        bytes_accessed=(2 * M * d_model * 4            # x in + out (f32)
                        + 2 * d_model * d_inner * 2    # bf16 weights
                        + (d_inner + 2 * d_model) * 4))

    def _const(shape, index_map):
        # Constant-index operand: a second pipeline buffer would be dead VMEM.
        return pl.BlockSpec(shape, index_map, pipeline_mode=pl.Buffered(1))

    # Weight slices: double-buffer when streaming along k, single-buffer when
    # the whole weight is resident (n_chunks == 1).
    w_spec = pl.BlockSpec if n_chunks > 1 else _const

    grid_spec = pltpu.PrefetchScalarGridSpec(
        num_scalar_prefetch=0,
        grid=(grid_rows, n_chunks),
        in_specs=[
            pl.BlockSpec((tm_eff, d_model), lambda i, k: (i, 0)),   # x rows
            w_spec((d_model, chunk), lambda i, k: (0, k)),          # W1 slice
            w_spec((1, chunk), lambda i, k: (0, k)),                # b1 slice
            w_spec((chunk, d_model), lambda i, k: (k, 0)),          # W2 slice
            _const((1, d_model), lambda i, k: (0, 0)),              # b2
        ],
        out_specs=pl.BlockSpec((tm_eff, d_model), lambda i, k: (i, 0)),
        scratch_shapes=[pltpu.VMEM((tm_eff, d_model), jnp.float32)],
    )

    out2d = pl.pallas_call(
        _ffn_kernel,
        out_shape=jax.ShapeDtypeStruct((M, d_model), x.dtype),
        grid_spec=grid_spec,
        # x rows are fully consumed before the same row tile is written back,
        # so aliasing is safe (saves an HBM buffer when the caller donates x).
        input_output_aliases={0: 0},
        cost_estimate=cost,
        compiler_params=pltpu.CompilerParams(
            dimension_semantics=("parallel", "arbitrary"),
            vmem_limit_bytes=vmem_limit),
    )(x2d, w1, b1, w2, b2)

    return out2d.reshape(B, T, d_model)


def init_params(key, d_model, d_inner):
    k1, k2, k3, k4 = jax.random.split(key, 4)
    # Match module __init__ for Scaling; small random for Linear weights.
    return {
        "scale": jnp.ones((d_model,), jnp.float32),
        "shift": jnp.zeros((d_model,), jnp.float32),
        "w1": jax.random.normal(k1, (d_model, d_inner), jnp.float32) * 0.05,
        "b1": jax.random.normal(k2, (d_inner,), jnp.float32) * 0.05,
        "w2": jax.random.normal(k3, (d_inner, d_model), jnp.float32) * 0.05,
        "b2": jax.random.normal(k4, (d_model,), jnp.float32) * 0.05,
    }


def _ffn_ref(x, params):
    y = params["scale"].reshape(1, 1, -1) * x + params["shift"].reshape(1, 1, -1)
    h = jnp.dot(y, params["w1"]) + params["b1"]
    h = h * jax.nn.sigmoid(h)
    return x + jnp.dot(h, params["w2"]) + params["b2"]


if __name__ == "__main__":
    key = jax.random.PRNGKey(0)
    B, T, d_model, d_inner = 2, 8, 32, 64
    kx, kp = jax.random.split(key)
    x = jax.random.normal(kx, (B, T, d_model), jnp.float32)
    x_mask = jnp.ones((B, T), jnp.bool_)  # unused, as in the PyTorch forward
    params = init_params(kp, d_model, d_inner)

    ref = _ffn_ref(x, params)  # f32 reference

    out = jax.jit(ffn_module)(x, x_mask, params)
    out = jax.block_until_ready(out)

    assert out.shape == (B, T, d_model)
    # bf16 MXU operands with f32 accumulation -> bf16-level tolerance vs f32 ref.
    assert jnp.allclose(out, ref, atol=2e-2, rtol=2e-2), "mismatch vs JAX reference"
    print("KERNEL_OK")
</pallas_src>

<mosaic_0001>
module attributes {stable_mosaic.version = 11 : i64} {
  func.func @_ffn_kernel(%arg0: i32, %arg1: i32, %arg2: memref<8x32xf32, #tpu.memory_space<vmem>>, %arg3: memref<32x64xbf16, #tpu.memory_space<vmem>>, %arg4: memref<1x64xf32, #tpu.memory_space<vmem>>, %arg5: memref<64x32xbf16, #tpu.memory_space<vmem>>, %arg6: memref<1x32xf32, #tpu.memory_space<vmem>>, %arg7: memref<8x32xf32, #tpu.memory_space<vmem>>, %arg8: memref<8x32xf32, #tpu.memory_space<vmem>>) attributes {dimension_semantics = [#tpu.dimension_semantics<parallel>, #tpu.dimension_semantics<arbitrary>], iteration_bounds = array<i64: 2, 1>, scalar_prefetch = 0 : i64, scratch_operands = 1 : i64, tpu.core_type = #tpu.core_type<tc>, window_params = [{transform_indices = @transform_0, window_bounds = array<i64: 8, 32>}, {pipeline_mode = #tpu.pipeline_mode<synchronous>, transform_indices = @transform_1, window_bounds = array<i64: 32, 64>}, {pipeline_mode = #tpu.pipeline_mode<synchronous>, transform_indices = @transform_2, window_bounds = array<i64: 1, 64>}, {pipeline_mode = #tpu.pipeline_mode<synchronous>, transform_indices = @transform_3, window_bounds = array<i64: 64, 32>}, {pipeline_mode = #tpu.pipeline_mode<synchronous>, transform_indices = @transform_4, window_bounds = array<i64: 1, 32>}, {transform_indices = @transform_5, window_bounds = array<i64: 8, 32>}]} {
    %c0_i32 = arith.constant 0 : i32
    %0 = arith.cmpi eq, %arg1, %c0_i32 : i32
    %1 = arith.extui %0 : i1 to i32
    %c0_i32_0 = arith.constant 0 : i32
    %2 = arith.cmpi ne, %1, %c0_i32_0 : i32
    scf.if %2 {
      %cst_17 = arith.constant 0.000000e+00 : f32
      %26 = vector.broadcast %cst_17 : f32 to vector<8x32xf32>
      %c0_18 = arith.constant 0 : index
      %c0_19 = arith.constant 0 : index
      %27 = vector.load %arg8[%c0_18, %c0_19] : memref<8x32xf32, #tpu.memory_space<vmem>>, vector<8x32xf32>
      tpu.vector_store %arg8[%c0_18, %c0_19], %26 {strides = array<i32>} : memref<8x32xf32, #tpu.memory_space<vmem>>, vector<8x32xf32>,
    } else {
    }
    %c0 = arith.constant 0 : index
    %c0_1 = arith.constant 0 : index
    %3 = vector.load %arg2[%c0, %c0_1] : memref<8x32xf32, #tpu.memory_space<vmem>>, vector<8x32xf32>
    %4 = arith.truncf %3 : vector<8x32xf32> to vector<8x32xbf16>
    %c0_2 = arith.constant 0 : index
    %c0_3 = arith.constant 0 : index
    %5 = vector.load %arg3[%c0_2, %c0_3] : memref<32x64xbf16, #tpu.memory_space<vmem>>, vector<32x64xbf16>
    %cst = arith.constant dense<0.000000e+00> : vector<8x64xf32>
    %6 = tpu.matmul %4, %5, %cst {dimension_numbers = #tpu.dot_dimension_numbers<[1], [0], [0], [1], [0, 0, 1, 1], [], []>} : vector<8x32xbf16>, vector<32x64xbf16>, vector<8x64xf32> -> vector<8x64xf32>
    %c0_4 = arith.constant 0 : index
    %c0_5 = arith.constant 0 : index
    %7 = vector.load %arg4[%c0_4, %c0_5] : memref<1x64xf32, #tpu.memory_space<vmem>>, vector<1x64xf32>
    %8 = vector.broadcast %7 : vector<1x64xf32> to vector<8x64xf32>
    %9 = arith.addf %6, %8 : vector<8x64xf32>
    %cst_6 = arith.constant 0.000000e+00 : f32
    %10 = vector.broadcast %cst_6 : f32 to vector<8x64xf32>
    %11 = arith.subf %10, %9 : vector<8x64xf32>
    %12 = math.exp %11 : vector<8x64xf32>
    %cst_7 = arith.constant 1.000000e+00 : f32
    %13 = vector.broadcast %cst_7 : f32 to vector<8x64xf32>
    %14 = arith.addf %13, %12 : vector<8x64xf32>
    %15 = tpu.reciprocal %14 {approx = true} : vector<8x64xf32> -> vector<8x64xf32>
    %16 = arith.mulf %9, %15 : vector<8x64xf32>
    %c0_8 = arith.constant 0 : index
    %c0_9 = arith.constant 0 : index
    %17 = vector.load %arg8[%c0_8, %c0_9] : memref<8x32xf32, #tpu.memory_space<vmem>>, vector<8x32xf32>
    %18 = arith.truncf %16 : vector<8x64xf32> to vector<8x64xbf16>
    %c0_10 = arith.constant 0 : index
    %c0_11 = arith.constant 0 : index
    %19 = vector.load %arg5[%c0_10, %c0_11] : memref<64x32xbf16, #tpu.memory_space<vmem>>, vector<64x32xbf16>
    %cst_12 = arith.constant dense<0.000000e+00> : vector<8x32xf32>
    %20 = tpu.matmul %18, %19, %cst_12 {dimension_numbers = #tpu.dot_dimension_numbers<[1], [0], [0], [1], [0, 0, 1, 1], [], []>} : vector<8x64xbf16>, vector<64x32xbf16>, vector<8x32xf32> -> vector<8x32xf32>
    %21 = arith.addf %17, %20 : vector<8x32xf32>
    %c0_13 = arith.constant 0 : index
    %c0_14 = arith.constant 0 : index
    %22 = vector.load %arg8[%c0_13, %c0_14] : memref<8x32xf32, #tpu.memory_space<vmem>>, vector<8x32xf32>
    tpu.vector_store %arg8[%c0_13, %c0_14], %21 {strides = array<i32>} : memref<8x32xf32, #tpu.memory_space<vmem>>, vector<8x32xf32>,
    %c0_i32_15 = arith.constant 0 : i32
    %23 = arith.cmpi eq, %arg1, %c0_i32_15 : i32
    %24 = arith.extui %23 : i1 to i32
    %c0_i32_16 = arith.constant 0 : i32
    %25 = arith.cmpi ne, %24, %c0_i32_16 : i32
    scf.if %25 {
      %c0_17 = arith.constant 0 : index
      %c0_18 = arith.constant 0 : index
      %26 = vector.load %arg2[%c0_17, %c0_18] : memref<8x32xf32, #tpu.memory_space<vmem>>, vector<8x32xf32>
      %c0_19 = arith.constant 0 : index
      %c0_20 = arith.constant 0 : index
      %27 = vector.load %arg8[%c0_19, %c0_20] : memref<8x32xf32, #tpu.memory_space<vmem>>, vector<8x32xf32>
      %28 = arith.addf %26, %27 : vector<8x32xf32>
      %c0_21 = arith.constant 0 : index
      %c0_22 = arith.constant 0 : index
      %29 = vector.load %arg6[%c0_21, %c0_22] : memref<1x32xf32, #tpu.memory_space<vmem>>, vector<1x32xf32>
      %30 = vector.broadcast %29 : vector<1x32xf32> to vector<8x32xf32>
      %31 = arith.addf %28, %30 : vector<8x32xf32>
      %c0_23 = arith.constant 0 : index
      %c0_24 = arith.constant 0 : index
      %32 = vector.load %arg7[%c0_23, %c0_24] : memref<8x32xf32, #tpu.memory_space<vmem>>, vector<8x32xf32>
      tpu.vector_store %arg7[%c0_23, %c0_24], %31 {strides = array<i32>} : memref<8x32xf32, #tpu.memory_space<vmem>>, vector<8x32xf32>,
    } else {
    }
    return
  }
  func.func @transform_0(%arg0: i32, %arg1: i32) -> (i32, i32) {
    %c0_i32 = arith.constant 0 : i32
    %c0_i32_0 = arith.constant 0 : i32
    return %arg0, %c0_i32 : i32, i32
  }
  func.func @transform_1(%arg0: i32, %arg1: i32) -> (i32, i32) {
    %c0_i32 = arith.constant 0 : i32
    %c0_i32_0 = arith.constant 0 : i32
    return %c0_i32, %arg1 : i32, i32
  }
  func.func @transform_2(%arg0: i32, %arg1: i32) -> (i32, i32) {
    %c0_i32 = arith.constant 0 : i32
    %c0_i32_0 = arith.constant 0 : i32
    return %c0_i32, %arg1 : i32, i32
  }
  func.func @transform_3(%arg0: i32, %arg1: i32) -> (i32, i32) {
    %c0_i32 = arith.constant 0 : i32
    %c0_i32_0 = arith.constant 0 : i32
    return %arg1, %c0_i32 : i32, i32
  }
  func.func @transform_4(%arg0: i32, %arg1: i32) -> (i32, i32) {
    %c0_i32 = arith.constant 0 : i32
    %c0_i32_0 = arith.constant 0 : i32
    %c0_i32_1 = arith.constant 0 : i32
    return %c0_i32, %c0_i32_0 : i32, i32
  }
  func.func @transform_5(%arg0: i32, %arg1: i32) -> (i32, i32) {
    %c0_i32 = arith.constant 0 : i32
    %c0_i32_0 = arith.constant 0 : i32
    return %arg0, %c0_i32 : i32, i32
  }
}

</mosaic_0001>

<bundles_post_ra>
// kernel: ffn_module.1
= control target key start
LH: loop header
LB: loop body
LE: loop exit
PB: predicated region body
PF: predicated region fallthrough
CT: control target
= control target key end

     0   :  { %s708_s18 = smov 0   ;;  %s710_s19 = smov 0   ;;  %s776_s0 = inlined_call_operand.vmem [shape: f32[16,32], index: 0, kind: input, shape index: {}, may-alias: {0,5}]   ;;  %s777_s1 = inlined_call_operand.vmem [shape: bf16[32,64], index: 1, kind: input, shape index: {}]   ;;  %s778_s2 = inlined_call_operand.vmem [shape: f32[1,64], index: 2, kind: input, shape index: {}]   ;;  %s779_s3 = inlined_call_operand.vmem [shape: bf16[64,32], index: 3, kind: input, shape index: {}]   ;;  %s780_s4 = inlined_call_operand.vmem [shape: f32[1,32], index: 4, kind: input, shape index: {}]   ;;  %s781_s5 = inlined_call_operand.vmem [shape: f32[16,32], index: 5, kind: output, shape index: {}, may-alias: {0,5}]  }
   0x1   :  { %s712_s20 = smov 0  }
   0x2 LB: > { %s27_s21 = sadd.s32 1, %s670_s19  ;;  %p573_p0 = scmp.ge.s32.totalorder %s674_s20, 1  ;;  %s674_s20 = sphi %s712_s20, %s15_s20   ;;  %s670_s19 = sphi %s710_s19, %s783_s19   ;;  %s666_s18 = sphi %s708_s18, %s782_s18  }
   0x3   : > { %p29_p1 = scmp.ge.s32.totalorder %s27_s21, 2  ;;  %p226_p2 = scmp.lt.s32.totalorder %s674_s20, 3 }
   0x5   : > { %s785_s21 = smov (%p29_p1, %s27_s21), 0  ;;  %p227_p3 = pnand %p573_p0, %p226_p2 }
   0x6   : > { %p264_p4 = scmp.lt.s32.totalorder (!%p227_p3), %s666_s18, 1 }
   0x7   : > { %230 = sbr.rel (%p227_p3) target bundleno = 462 (0x1ce), region = 40 }
   0xc   : > { %v642_v0 = vld [vmem:[%s777_s1 + $0x8] sm:$0xff]   ;;  %v676_v1 = vmov 0.0   ;;  %v643_v2 = vld [vmem:[%s777_s1] sm:$0xff]   ;;  %vm677_vm0 = vmmov 0   ;;  %vm290_vm1 = vcmask 261120   ;;  %s787_s18 = smov (!%p264_p4, %s666_s18), 1 }
   0xd   : > { %596 = vmatprep.subr.bf16.mxu0 %v676_v1  ;;  %604 = vmatprep.subr.bf16.mxu1 %v676_v1  ;;  %291 = vst.msk [vmem:[#allocation2] sm:$0xff] %vm290_vm1, %v676_v1  ;;  %s574_s26 = sshll.u32 %s787_s18, 3  ;;  %v644_v5 = vld [vmem:[%s779_s3 + $0x18] sm:$0xff]   ;;  %v645_v6 = vld [vmem:[%s779_s3 + $0x10] sm:$0xff]   ;;  %v646_v7 = vld [vmem:[%s779_s3 + $0x8] sm:$0xff]   ;;  %vm401_vm2 = vcmask 523264  }
   0xe   : > { %597 = vmatpush3.bf16.msra.mxu0 %v642_v0  ;;  %600 = vmatprep.mubr.msk.bf16.mxu0 %vm677_vm0, %v676_v1  ;;  %s267_s29 = scalar_lea.vmem %s776_s0, %s574_s26  ;;  %v647_v8 = vld [vmem:[%s779_s3] sm:$0xff]   ;;  %s284_s23 = scalar_lea.vmem %s781_s5, %s574_s26 }
   0xf   : > { %598 = vmatprep.subr.bf16.mxu0 %v676_v1  ;;  %612 = vmatprep.mubr.msk.bf16.mxu1 %vm677_vm0, %v676_v1  ;;  %v292_v3 = vld [vmem:[%s267_s29] sm:$0xff] }
  0x10   : > { %v293_v4 = vpack.c.bf16 %v292_v3, %v292_v3  ;;  %605 = vmatpush3.bf16.msra.mxu1 %v644_v5  ;;  %v576_v9 = vld [vmem:[%s778_s2] ss:$0 sm:$0xff] }
  0x11   : > { %606 = vmatprep.subr.bf16.mxu1 %v676_v1  ;;  %v585_v29 = vld [vmem:[%s780_s4] ss:$0 sm:$0xff] }
  0x12   : > { %599 = vmatpush3.bf16.msra.mxu0 %v643_v2 }
  0x14   : > { %607 = vmatpush3.bf16.msra.mxu1 %v645_v6  ;;  %v367_v22 = vld [vmem:[#allocation2] sm:$0xff] }
  0x15   : > { %601 = vmatmul.mubr.msk.bf16.vlgmr.msra.gmra.mxu0 %vm290_vm1, %v293_v4  ;;  %608 = vmatprep.subr.bf16.mxu1 %v676_v1 }
  0x18   : > { %609 = vmatpush3.bf16.msra.mxu1 %v646_v7 }
  0x19   : > { %610 = vmatprep.subr.bf16.mxu1 %v676_v1 }
  0x1c   : > { %611 = vmatpush3.bf16.msra.mxu1 %v647_v8 }
  0xd5   : > { %v355_v10 = vpop.f32.mrf.mxu0 }
  0xd6   : > { %v356_v11 = vadd.f32 %v576_v9, %v355_v10 }
  0xd7   : > { %v602_v12 = vpop.f32.mrf.mxu0 }
  0xd8   : > { %v361_v13 = vsub.f32 0.0, %v356_v11 }
  0xd9   : > { %v358_v14 = vpop.f32.mrf.mxu0 }
  0xda   : > { %v362_v15 = vmul.f32 1.442695, %v361_v13 }
  0xdb   : > { %v603_v16 = vpop.f32.mrf.mxu0 }
  0xdc   : > { %648 = vpow2.f32 %v362_v15 }
  0xe9   : > { %v649_v17 = vpop.eup %648 }
  0xea   : > { %v364_v18 = vadd.f32 1.0, %v649_v17 }
  0xec   : > { %650 = vrcp.f32 %v364_v18 }
  0xf9   : > { %v651_v19 = vpop.eup %650 }
  0xfa   : > { %v366_v20 = vmul.f32 %v651_v19, %v356_v11 }
  0xfc   : > { %v368_v21 = vpack.c.bf16 %v366_v20, %v366_v20 }
  0xfe   : > { %613 = vmatmul.mubr.msk.bf16.vlgmr.msra.gmra.mxu1 %vm401_vm2, %v368_v21 }
 0x1be   : > { %v439_v23 = vpop.f32.mrf.mxu1 }
 0x1bf   : > { %v445_v24 = vadd.f32 %v439_v23, %v367_v22 }
 0x1c0   : > { %v614_v25 = vpop.f32.mrf.mxu1 }
 0x1c1   : > { %446 = vst.msk [vmem:[#allocation2] sm:$0xff] %vm290_vm1, %v445_v24 }
 0x1c2   : > { %v442_v26 = vpop.f32.mrf.mxu1 }
 0x1c4   : > { %v615_v27 = vpop.f32.mrf.mxu1 }
 0x1c8   : > { %v451_v28 = vld [vmem:[#allocation2] sm:$0xff] }
 0x1c9   : > { %v452_v30 = vadd.f32 %v451_v28, %v292_v3 }
 0x1cb   : > { %v460_v31 = vadd.f32 %v585_v29, %v452_v30 }
 0x1cd   : > { %461 = vst.msk [vmem:[%s284_s23] sm:$0xff] %vm290_vm1, %v460_v31 }
 0x1ce PF: > { %s15_s20 = sadd.s32 1, %s674_s20   ;;  %s782_s18 = smov %s670_s19 }
 0x1cf   : > { %p12_p5 = scmp.ge.s32.totalorder %s15_s20, 4   ;;  %s783_s19 = smov %s785_s21 }
 0x1d1   :  { %14 = sbr.rel (!%p12_p5) target bundleno = 2 (0x2), region = 87 }

</bundles_post_ra>
